<compile_context>
chip_gen: v6e
topology: v6e:2x2x1
jax: 0.10.0
libtpu: 0.0.40
codegen_flags: <defaults>
</compile_context>

<pallas_src>
import functools

import jax
import jax.numpy as jnp
from jax.experimental import pallas as pl
from jax.experimental.pallas import tpu as pltpu

EPS = 1e-5
NEG_SLOPE = 0.01  # torch.nn.LeakyReLU default


def _leaky(v):
    # valid for 0 < slope < 1: max(v, s*v) == leaky_relu(v)
    return jnp.maximum(v, NEG_SLOPE * v)


def _edge_masks(p, w_len):
    """Row-edge masks for a whole-row tile of flattened width p (p % w_len == 0)."""
    col = jax.lax.broadcasted_iota(jnp.int32, (1, p), 1) % w_len
    return col == 0, col == (w_len - 1)


def _conv1x3(a, wcat, left_mask, right_mask):
    """Fused 1x3 conv: stack the three taps along channels (K = 3*C) and run a
    single MXU matmul.  wcat: (Cout, 3*Cin), a: (Cin, P) -> (Cout, P)."""
    _, p = a.shape
    a_m1 = jnp.where(left_mask, 0.0, pltpu.roll(a, shift=1, axis=1))       # a[p-1]
    a_p1 = jnp.where(right_mask, 0.0, pltpu.roll(a, shift=p - 1, axis=1))  # a[p+1]
    xs = jnp.concatenate([a_m1, a, a_p1], axis=0)
    return jnp.dot(wcat, xs, preferred_element_type=jnp.float32)


def _tile_stats(h):
    """Per-tile (sum, sum-of-squares) over the lane axis -> (C, 2)."""
    return jnp.concatenate(
        [jnp.sum(h, axis=1, keepdims=True),
         jnp.sum(h * h, axis=1, keepdims=True)], axis=1)


# ---- stage 1: xp = pre(x); partial BN1 stats of conv1(xp) (h1 not stored) ----
def _stage1_kernel(w_len, x_ref, wpre_ref, w1_ref, xp_ref, st1_ref):
    lm, rm = _edge_masks(x_ref.shape[-1], w_len)
    x = x_ref[...].astype(jnp.float32)                                   # (Cin, P)
    xp = jnp.dot(wpre_ref[...], x, preferred_element_type=jnp.float32)   # (Cout, P)
    h1 = _conv1x3(xp, w1_ref[...], lm, rm)
    xp_ref[...] = xp.astype(xp_ref.dtype)
    st1_ref[...] = _tile_stats(h1)


# ---- stage 2: h1 = conv1(xp); a = leaky(BN1(h1)); h2 = conv2(a); BN2 stats ----
def _stage2_kernel(w_len, xp_ref, sc1_ref, sh1_ref, w1_ref, w2_ref, h2_ref, st2_ref):
    lm, rm = _edge_masks(xp_ref.shape[-1], w_len)
    xp = xp_ref[...].astype(jnp.float32)
    h1 = _conv1x3(xp, w1_ref[...], lm, rm)          # recompute (saves h1 HBM roundtrip)
    a = _leaky(h1 * sc1_ref[...] + sh1_ref[...])
    h2 = _conv1x3(a, w2_ref[...], lm, rm)
    h2_ref[...] = h2.astype(h2_ref.dtype)
    st2_ref[...] = _tile_stats(h2)


# ---- stage 3: out = leaky(xp + BN2(h2)) ----
def _stage3_kernel(xp_ref, h2_ref, sc2_ref, sh2_ref, o_ref):
    xp = xp_ref[...].astype(jnp.float32)
    h2 = h2_ref[...].astype(jnp.float32)
    o_ref[...] = _leaky(xp + h2 * sc2_ref[...] + sh2_ref[...]).astype(o_ref.dtype)


def _choose_tile_p(h, w, c, vmem_budget=24 * 1024 * 1024):
    """Largest whole-row tile whose flattened width is lane-aligned (multiple of
    128), fits a rough per-stage VMEM budget and pipelines well; falls back to
    the full H*W plane (always legal since it equals the full array dim)."""
    # heaviest stage (stage 2): 2x double-buffered in/out tiles (4*c) plus
    # in-kernel f32 temporaries (h1, a, 3-tap concat ~ 5*c), per pixel column.
    per_p = 4 * (9 * c + 4)
    max_tile_p = max(128, min(2048, (vmem_budget // per_p) // 128 * 128))
    cands = [th * w for th in range(1, h + 1)
             if h % th == 0 and (th * w) % 128 == 0 and th * w <= max_tile_p]
    return max(cands) if cands else h * w


def _bn_fold(stats, gamma, beta, count):
    """Finalize BN from per-tile partials and fold affine: y = x*scale + shift."""
    tot = stats.sum(axis=(0, 1))                       # (C, 2)
    mean = tot[:, 0] / count
    var = jnp.maximum(tot[:, 1] / count - mean * mean, 0.0)  # clamp: cancellation safety
    inv = jax.lax.rsqrt(var + EPS)
    scale = gamma * inv
    shift = beta - mean * scale
    return (scale.reshape(-1, 1).astype(jnp.float32),
            shift.reshape(-1, 1).astype(jnp.float32))


def resblock2d(x_nchw, params):
    """x_nchw: (N, Cin, H, W) float32, like the PyTorch module.
    params = (wpre(Cout,Cin), w1(Cout,Cout,3), g1(Cout,), b1(Cout,),
              w2(Cout,Cout,3), g2(Cout,), b2(Cout,)).  Returns (N, Cout, H, W).
    For the Identity `pre` case (Cin == Cout) pass wpre = jnp.eye(Cout)."""
    wpre, w1, g1, b1, w2, g2, b2 = params
    n, cin, h, w = x_nchw.shape
    cout = wpre.shape[0]
    p = h * w
    tile_p = _choose_tile_p(h, w, cout)
    ht = p // tile_p
    grid = (n, ht)

    x = x_nchw.reshape(n, cin, p)                                   # trailing-dim merge (free)
    w1c = jnp.transpose(w1, (0, 2, 1)).reshape(cout, 3 * cout)      # (Cout, 3*Cout), tap-major
    w2c = jnp.transpose(w2, (0, 2, 1)).reshape(cout, 3 * cout)

    def act_spec(c):
        return pl.BlockSpec((None, c, tile_p), lambda i, j: (i, 0, j))

    def full_spec(shape):
        return pl.BlockSpec(shape, lambda i, j: (0,) * len(shape))

    stats_spec = pl.BlockSpec((None, None, cout, 2), lambda i, j: (i, j, 0, 0))
    act_shape = jax.ShapeDtypeStruct((n, cout, p), jnp.float32)
    stats_shape = jax.ShapeDtypeStruct((n, ht, cout, 2), jnp.float32)

    cp = pltpu.CompilerParams(
        dimension_semantics=("parallel", "parallel"),
        vmem_limit_bytes=32 * 1024 * 1024,
    )
    mm_flops = 2 * n * p * 3 * cout * cout  # one 1x3 conv as a fused matmul

    # stage 1: pre + conv1-for-stats
    xp_act, st1 = pl.pallas_call(
        functools.partial(_stage1_kernel, w),
        grid=grid,
        in_specs=[act_spec(cin), full_spec((cout, cin)), full_spec((cout, 3 * cout))],
        out_specs=[act_spec(cout), stats_spec],
        out_shape=[act_shape, stats_shape],
        compiler_params=cp,
        cost_estimate=pl.CostEstimate(
            flops=2 * n * p * cin * cout + mm_flops, transcendentals=0,
            bytes_accessed=4 * (n * cin * p + n * cout * p)),
    )(x, wpre, w1c)

    sc1, sh1 = _bn_fold(st1, g1, b1, float(n * p))

    # stage 2: conv1 (recomputed) -> BN1 -> leaky -> conv2 (+ BN2 partials)
    h2, st2 = pl.pallas_call(
        functools.partial(_stage2_kernel, w),
        grid=grid,
        in_specs=[act_spec(cout), full_spec((cout, 1)), full_spec((cout, 1)),
                  full_spec((cout, 3 * cout)), full_spec((cout, 3 * cout))],
        out_specs=[act_spec(cout), stats_spec],
        out_shape=[act_shape, stats_shape],
        compiler_params=cp,
        cost_estimate=pl.CostEstimate(
            flops=2 * mm_flops + 4 * n * p * cout, transcendentals=0,
            bytes_accessed=4 * 2 * n * cout * p),
    )(xp_act, sc1, sh1, w1c, w2c)

    sc2, sh2 = _bn_fold(st2, g2, b2, float(n * p))

    # stage 3: residual add + BN2 apply + leaky
    out = pl.pallas_call(
        _stage3_kernel,
        grid=grid,
        in_specs=[act_spec(cout), act_spec(cout), full_spec((cout, 1)),
                  full_spec((cout, 1))],
        out_specs=act_spec(cout),
        out_shape=act_shape,
        compiler_params=cp,
        cost_estimate=pl.CostEstimate(
            flops=4 * n * p * cout, transcendentals=0,
            bytes_accessed=4 * 3 * n * cout * p),
    )(xp_act, h2, sc2, sh2)

    return out.reshape(n, cout, h, w)


# ---- pure-JAX reference (NCHW, torch training-mode BatchNorm semantics) ----
def resblock2d_ref(x, params):
    wpre, w1, g1, b1, w2, g2, b2 = params
    x = x.astype(jnp.float32)

    def mix(a, m):                       # m: (D, C)
        return jnp.einsum('dc,nchw->ndhw', m, a)

    def conv(a, wk):                     # wk: (D, C, 3), padding (0, 1) along W
        pad = jnp.pad(a, ((0, 0), (0, 0), (0, 0), (1, 1)))
        return (mix(pad[..., :-2], wk[:, :, 0]) +
                mix(pad[..., 1:-1], wk[:, :, 1]) +
                mix(pad[..., 2:], wk[:, :, 2]))

    def bn(a, g, b):
        mean = a.mean(axis=(0, 2, 3), keepdims=True)
        var = ((a - mean) ** 2).mean(axis=(0, 2, 3), keepdims=True)
        return ((a - mean) * jax.lax.rsqrt(var + EPS)
                * g.reshape(1, -1, 1, 1) + b.reshape(1, -1, 1, 1))

    xp = mix(x, wpre)
    hh = _leaky(bn(conv(xp, w1), g1, b1))
    hh = bn(conv(hh, w2), g2, b2)
    return _leaky(xp + hh)


if __name__ == "__main__":
    key = jax.random.PRNGKey(0)
    N, Cin, H, W = 2, 4, 16, 16
    Cout = 8   # in_channel != out_channel -> `pre` is a real 1x1 conv

    ks = jax.random.split(key, 6)
    x = jax.random.normal(ks[0], (N, Cin, H, W), jnp.float32)
    # Torch-like parameter shapes (singleton kernel-H axis dropped, k_w axis last).
    wpre = jax.random.normal(ks[1], (Cout, Cin), jnp.float32) * 0.2      # Conv2d(Cin,Cout,(1,1))
    w1 = jax.random.normal(ks[2], (Cout, Cout, 3), jnp.float32) * 0.2    # Conv2d(Cout,Cout,(1,3))
    w2 = jax.random.normal(ks[3], (Cout, Cout, 3), jnp.float32) * 0.2
    g1 = 1.0 + 0.1 * jax.random.normal(ks[4], (Cout,), jnp.float32)      # BatchNorm2d affine
    b1 = 0.1 * jax.random.normal(ks[5], (Cout,), jnp.float32)
    g2 = jnp.ones((Cout,), jnp.float32)
    b2 = jnp.zeros((Cout,), jnp.float32)
    params = (wpre, w1, g1, b1, w2, g2, b2)

    out = jax.block_until_ready(jax.jit(resblock2d)(x, params))
    ref = resblock2d_ref(x, params)
    assert out.shape == (N, Cout, H, W), out.shape
    err = jnp.max(jnp.abs(out - ref))
    assert jnp.allclose(out, ref, rtol=1e-3, atol=1e-3), f"mismatch vs reference (max abs err {err})"
    print("KERNEL_OK")
</pallas_src>

<mosaic_0001>
module attributes {stable_mosaic.version = 11 : i64} {
  func.func @_stage1_kernel(%arg0: i32, %arg1: i32, %arg2: memref<1x4x256xf32, #tpu.memory_space<vmem>>, %arg3: memref<8x4xf32, #tpu.memory_space<vmem>>, %arg4: memref<8x24xf32, #tpu.memory_space<vmem>>, %arg5: memref<1x8x256xf32, #tpu.memory_space<vmem>>, %arg6: memref<1x1x8x2xf32, #tpu.memory_space<vmem>>) attributes {dimension_semantics = [#tpu.dimension_semantics<parallel>, #tpu.dimension_semantics<parallel>], iteration_bounds = array<i64: 2, 1>, scalar_prefetch = 0 : i64, scratch_operands = 0 : i64, tpu.core_type = #tpu.core_type<tc>, window_params = [{transform_indices = @transform_0, window_bounds = array<i64: 1, 4, 256>}, {pipeline_mode = #tpu.pipeline_mode<synchronous>, transform_indices = @transform_1, window_bounds = array<i64: 8, 4>}, {pipeline_mode = #tpu.pipeline_mode<synchronous>, transform_indices = @transform_2, window_bounds = array<i64: 8, 24>}, {transform_indices = @transform_3, window_bounds = array<i64: 1, 8, 256>}, {transform_indices = @transform_4, window_bounds = array<i64: 1, 1, 8, 2>}]} {
    %0 = tpu.iota {dimensions = array<i32: 1>} : vector<1x256xi32>
    %c16_i32 = arith.constant 16 : i32
    %c0_i32 = arith.constant 0 : i32
    %1 = arith.cmpi eq, %c16_i32, %c0_i32 : i32
    %c1_i32 = arith.constant 1 : i32
    %2 = arith.select %1, %c1_i32, %c16_i32 : i32
    %3 = vector.broadcast %2 : i32 to vector<1x256xi32>
    %4 = arith.remsi %0, %3 : vector<1x256xi32>
    %c0_i32_0 = arith.constant 0 : i32
    %5 = vector.broadcast %c0_i32_0 : i32 to vector<1x256xi32>
    %6 = arith.cmpi ne, %4, %5 : vector<1x256xi32>
    %c0_i32_1 = arith.constant 0 : i32
    %7 = vector.broadcast %c0_i32_1 : i32 to vector<1x256xi32>
    %8 = arith.cmpi slt, %4, %7 : vector<1x256xi32>
    %c0_i32_2 = arith.constant 0 : i32
    %9 = arith.cmpi slt, %2, %c0_i32_2 : i32
    %10 = vector.broadcast %9 : i1 to vector<1x256xi1>
    %11 = vector.broadcast %10 : vector<1x256xi1> to vector<1x256xi1>
    %12 = arith.xori %8, %11 : vector<1x256xi1>
    %13 = arith.andi %12, %6 : vector<1x256xi1>
    %14 = vector.broadcast %2 : i32 to vector<1x256xi32>
    %15 = arith.addi %4, %14 : vector<1x256xi32>
    %16 = arith.select %13, %15, %4 : vector<1x256xi1>, vector<1x256xi32>
    %c0_i32_3 = arith.constant 0 : i32
    %17 = vector.broadcast %c0_i32_3 : i32 to vector<1x256xi32>
    %18 = arith.cmpi eq, %16, %17 : vector<1x256xi32>
    %c15_i32 = arith.constant 15 : i32
    %19 = vector.broadcast %c15_i32 : i32 to vector<1x256xi32>
    %20 = arith.cmpi eq, %16, %19 : vector<1x256xi32>
    %c0 = arith.constant 0 : index
    %c0_4 = arith.constant 0 : index
    %c0_5 = arith.constant 0 : index
    %21 = vector.load %arg2[%c0, %c0_4, %c0_5] : memref<1x4x256xf32, #tpu.memory_space<vmem>>, vector<1x4x256xf32>
    %22 = vector.shape_cast %21 : vector<1x4x256xf32> to vector<4x256xf32>
    %c0_6 = arith.constant 0 : index
    %c0_7 = arith.constant 0 : index
    %23 = vector.load %arg3[%c0_6, %c0_7] : memref<8x4xf32, #tpu.memory_space<vmem>>, vector<8x4xf32>
    %cst = arith.constant dense<0.000000e+00> : vector<8x256xf32>
    %24 = tpu.matmul %23, %22, %cst {dimension_numbers = #tpu.dot_dimension_numbers<[1], [0], [0], [1], [0, 0, 1, 1], [], []>} : vector<8x4xf32>, vector<4x256xf32>, vector<8x256xf32> -> vector<8x256xf32>
    %c0_8 = arith.constant 0 : index
    %c0_9 = arith.constant 0 : index
    %25 = vector.load %arg4[%c0_8, %c0_9] : memref<8x24xf32, #tpu.memory_space<vmem>>, vector<8x24xf32>
    %c1_i32_10 = arith.constant 1 : i32
    %26 = tpu.dynamic_rotate %24 by %c1_i32_10 dim 1 : vector<8x256xf32>, i32 -> vector<8x256xf32>
    %cst_11 = arith.constant 0.000000e+00 : f32
    %27 = vector.shape_cast %18 : vector<1x256xi1> to vector<1x256xi1>
    %28 = vector.broadcast %27 : vector<1x256xi1> to vector<8x256xi1>
    %29 = vector.broadcast %cst_11 : f32 to vector<8x256xf32>
    %30 = arith.select %28, %29, %26 : vector<8x256xi1>, vector<8x256xf32>
    %c255_i32 = arith.constant 255 : i32
    %31 = tpu.dynamic_rotate %24 by %c255_i32 dim 1 : vector<8x256xf32>, i32 -> vector<8x256xf32>
    %cst_12 = arith.constant 0.000000e+00 : f32
    %32 = vector.shape_cast %20 : vector<1x256xi1> to vector<1x256xi1>
    %33 = vector.broadcast %32 : vector<1x256xi1> to vector<8x256xi1>
    %34 = vector.broadcast %cst_12 : f32 to vector<8x256xf32>
    %35 = arith.select %33, %34, %31 : vector<8x256xi1>, vector<8x256xf32>
    %36 = tpu.concatenate %30, %24, %35 in 0 : vector<8x256xf32>, vector<8x256xf32>, vector<8x256xf32> -> vector<24x256xf32>
    %cst_13 = arith.constant dense<0.000000e+00> : vector<8x256xf32>
    %37 = tpu.matmul %25, %36, %cst_13 {dimension_numbers = #tpu.dot_dimension_numbers<[1], [0], [0], [1], [0, 0, 1, 1], [], []>} : vector<8x24xf32>, vector<24x256xf32>, vector<8x256xf32> -> vector<8x256xf32>
    %c0_14 = arith.constant 0 : index
    %c0_15 = arith.constant 0 : index
    %c0_16 = arith.constant 0 : index
    %38 = vector.load %arg5[%c0_14, %c0_15, %c0_16] : memref<1x8x256xf32, #tpu.memory_space<vmem>>, vector<1x8x256xf32>
    %39 = vector.shape_cast %38 : vector<1x8x256xf32> to vector<8x256xf32>
    %40 = vector.shape_cast %24 : vector<8x256xf32> to vector<1x8x256xf32>
    tpu.vector_store %arg5[%c0_14, %c0_15, %c0_16], %40 {strides = array<i32>} : memref<1x8x256xf32, #tpu.memory_space<vmem>>, vector<1x8x256xf32>,
    %cst_17 = arith.constant dense<0.000000e+00> : vector<8xf32>
    %41 = vector.multi_reduction <add>, %37, %cst_17 [1] : vector<8x256xf32> to vector<8xf32>
    %42 = vector.shape_cast %41 : vector<8xf32> to vector<8x1xf32>
    %43 = arith.mulf %37, %37 : vector<8x256xf32>
    %cst_18 = arith.constant dense<0.000000e+00> : vector<8xf32>
    %44 = vector.multi_reduction <add>, %43, %cst_18 [1] : vector<8x256xf32> to vector<8xf32>
    %45 = vector.shape_cast %44 : vector<8xf32> to vector<8x1xf32>
    %46 = tpu.concatenate %42, %45 in 1 : vector<8x1xf32>, vector<8x1xf32> -> vector<8x2xf32>
    %c0_19 = arith.constant 0 : index
    %c0_20 = arith.constant 0 : index
    %c0_21 = arith.constant 0 : index
    %c0_22 = arith.constant 0 : index
    %47 = vector.load %arg6[%c0_19, %c0_20, %c0_21, %c0_22] : memref<1x1x8x2xf32, #tpu.memory_space<vmem>>, vector<1x1x8x2xf32>
    %48 = vector.shape_cast %47 : vector<1x1x8x2xf32> to vector<8x2xf32>
    %49 = vector.shape_cast %46 : vector<8x2xf32> to vector<1x1x8x2xf32>
    tpu.vector_store %arg6[%c0_19, %c0_20, %c0_21, %c0_22], %49 {strides = array<i32>} : memref<1x1x8x2xf32, #tpu.memory_space<vmem>>, vector<1x1x8x2xf32>,
    return
  }
  func.func @transform_0(%arg0: i32, %arg1: i32) -> (i32, i32, i32) {
    %c0_i32 = arith.constant 0 : i32
    %c0_i32_0 = arith.constant 0 : i32
    return %arg0, %c0_i32, %arg1 : i32, i32, i32
  }
  func.func @transform_1(%arg0: i32, %arg1: i32) -> (i32, i32) {
    %c0_i32 = arith.constant 0 : i32
    %c0_i32_0 = arith.constant 0 : i32
    %c0_i32_1 = arith.constant 0 : i32
    return %c0_i32, %c0_i32_0 : i32, i32
  }
  func.func @transform_2(%arg0: i32, %arg1: i32) -> (i32, i32) {
    %c0_i32 = arith.constant 0 : i32
    %c0_i32_0 = arith.constant 0 : i32
    %c0_i32_1 = arith.constant 0 : i32
    return %c0_i32, %c0_i32_0 : i32, i32
  }
  func.func @transform_3(%arg0: i32, %arg1: i32) -> (i32, i32, i32) {
    %c0_i32 = arith.constant 0 : i32
    %c0_i32_0 = arith.constant 0 : i32
    return %arg0, %c0_i32, %arg1 : i32, i32, i32
  }
  func.func @transform_4(%arg0: i32, %arg1: i32) -> (i32, i32, i32, i32) {
    %c0_i32 = arith.constant 0 : i32
    %c0_i32_0 = arith.constant 0 : i32
    %c0_i32_1 = arith.constant 0 : i32
    return %arg0, %arg1, %c0_i32, %c0_i32_0 : i32, i32, i32, i32
  }
}

module attributes {stable_mosaic.version = 11 : i64} {
  func.func @_stage3_kernel(%arg0: i32, %arg1: i32, %arg2: memref<1x8x256xf32, #tpu.memory_space<vmem>>, %arg3: memref<1x8x256xf32, #tpu.memory_space<vmem>>, %arg4: memref<8x1xf32, #tpu.memory_space<vmem>>, %arg5: memref<8x1xf32, #tpu.memory_space<vmem>>, %arg6: memref<1x8x256xf32, #tpu.memory_space<vmem>>) attributes {dimension_semantics = [#tpu.dimension_semantics<parallel>, #tpu.dimension_semantics<parallel>], iteration_bounds = array<i64: 2, 1>, scalar_prefetch = 0 : i64, scratch_operands = 0 : i64, tpu.core_type = #tpu.core_type<tc>, window_params = [{transform_indices = @transform_0, window_bounds = array<i64: 1, 8, 256>}, {transform_indices = @transform_1, window_bounds = array<i64: 1, 8, 256>}, {pipeline_mode = #tpu.pipeline_mode<synchronous>, transform_indices = @transform_2, window_bounds = array<i64: 8, 1>}, {pipeline_mode = #tpu.pipeline_mode<synchronous>, transform_indices = @transform_3, window_bounds = array<i64: 8, 1>}, {transform_indices = @transform_4, window_bounds = array<i64: 1, 8, 256>}]} {
    %c0 = arith.constant 0 : index
    %c0_0 = arith.constant 0 : index
    %c0_1 = arith.constant 0 : index
    %0 = vector.load %arg2[%c0, %c0_0, %c0_1] : memref<1x8x256xf32, #tpu.memory_space<vmem>>, vector<1x8x256xf32>
    %1 = vector.shape_cast %0 : vector<1x8x256xf32> to vector<8x256xf32>
    %c0_2 = arith.constant 0 : index
    %c0_3 = arith.constant 0 : index
    %c0_4 = arith.constant 0 : index
    %2 = vector.load %arg3[%c0_2, %c0_3, %c0_4] : memref<1x8x256xf32, #tpu.memory_space<vmem>>, vector<1x8x256xf32>
    %3 = vector.shape_cast %2 : vector<1x8x256xf32> to vector<8x256xf32>
    %c0_5 = arith.constant 0 : index
    %c0_6 = arith.constant 0 : index
    %4 = vector.load %arg4[%c0_5, %c0_6] : memref<8x1xf32, #tpu.memory_space<vmem>>, vector<8x1xf32>
    %5 = vector.broadcast %4 : vector<8x1xf32> to vector<8x256xf32>
    %6 = arith.mulf %3, %5 : vector<8x256xf32>
    %7 = arith.addf %1, %6 : vector<8x256xf32>
    %c0_7 = arith.constant 0 : index
    %c0_8 = arith.constant 0 : index
    %8 = vector.load %arg5[%c0_7, %c0_8] : memref<8x1xf32, #tpu.memory_space<vmem>>, vector<8x1xf32>
    %9 = vector.broadcast %8 : vector<8x1xf32> to vector<8x256xf32>
    %10 = arith.addf %7, %9 : vector<8x256xf32>
    %cst = arith.constant 0.00999999977 : f32
    %11 = vector.broadcast %cst : f32 to vector<8x256xf32>
    %12 = arith.mulf %11, %10 : vector<8x256xf32>
    %13 = arith.maximumf %10, %12 : vector<8x256xf32>
    %c0_9 = arith.constant 0 : index
    %c0_10 = arith.constant 0 : index
    %c0_11 = arith.constant 0 : index
    %14 = vector.load %arg6[%c0_9, %c0_10, %c0_11] : memref<1x8x256xf32, #tpu.memory_space<vmem>>, vector<1x8x256xf32>
    %15 = vector.shape_cast %14 : vector<1x8x256xf32> to vector<8x256xf32>
    %16 = vector.shape_cast %13 : vector<8x256xf32> to vector<1x8x256xf32>
    tpu.vector_store %arg6[%c0_9, %c0_10, %c0_11], %16 {strides = array<i32>} : memref<1x8x256xf32, #tpu.memory_space<vmem>>, vector<1x8x256xf32>,
    return
  }
  func.func @transform_0(%arg0: i32, %arg1: i32) -> (i32, i32, i32) {
    %c0_i32 = arith.constant 0 : i32
    %c0_i32_0 = arith.constant 0 : i32
    return %arg0, %c0_i32, %arg1 : i32, i32, i32
  }
  func.func @transform_1(%arg0: i32, %arg1: i32) -> (i32, i32, i32) {
    %c0_i32 = arith.constant 0 : i32
    %c0_i32_0 = arith.constant 0 : i32
    return %arg0, %c0_i32, %arg1 : i32, i32, i32
  }
  func.func @transform_2(%arg0: i32, %arg1: i32) -> (i32, i32) {
    %c0_i32 = arith.constant 0 : i32
    %c0_i32_0 = arith.constant 0 : i32
    %c0_i32_1 = arith.constant 0 : i32
    return %c0_i32, %c0_i32_0 : i32, i32
  }
  func.func @transform_3(%arg0: i32, %arg1: i32) -> (i32, i32) {
    %c0_i32 = arith.constant 0 : i32
    %c0_i32_0 = arith.constant 0 : i32
    %c0_i32_1 = arith.constant 0 : i32
    return %c0_i32, %c0_i32_0 : i32, i32
  }
  func.func @transform_4(%arg0: i32, %arg1: i32) -> (i32, i32, i32) {
    %c0_i32 = arith.constant 0 : i32
    %c0_i32_0 = arith.constant 0 : i32
    return %arg0, %c0_i32, %arg1 : i32, i32, i32
  }
}

module attributes {stable_mosaic.version = 11 : i64} {
  func.func @_stage2_kernel(%arg0: i32, %arg1: i32, %arg2: memref<1x8x256xf32, #tpu.memory_space<vmem>>, %arg3: memref<8x1xf32, #tpu.memory_space<vmem>>, %arg4: memref<8x1xf32, #tpu.memory_space<vmem>>, %arg5: memref<8x24xf32, #tpu.memory_space<vmem>>, %arg6: memref<8x24xf32, #tpu.memory_space<vmem>>, %arg7: memref<1x8x256xf32, #tpu.memory_space<vmem>>, %arg8: memref<1x1x8x2xf32, #tpu.memory_space<vmem>>) attributes {dimension_semantics = [#tpu.dimension_semantics<parallel>, #tpu.dimension_semantics<parallel>], iteration_bounds = array<i64: 2, 1>, scalar_prefetch = 0 : i64, scratch_operands = 0 : i64, tpu.core_type = #tpu.core_type<tc>, window_params = [{transform_indices = @transform_0, window_bounds = array<i64: 1, 8, 256>}, {pipeline_mode = #tpu.pipeline_mode<synchronous>, transform_indices = @transform_1, window_bounds = array<i64: 8, 1>}, {pipeline_mode = #tpu.pipeline_mode<synchronous>, transform_indices = @transform_2, window_bounds = array<i64: 8, 1>}, {pipeline_mode = #tpu.pipeline_mode<synchronous>, transform_indices = @transform_3, window_bounds = array<i64: 8, 24>}, {pipeline_mode = #tpu.pipeline_mode<synchronous>, transform_indices = @transform_4, window_bounds = array<i64: 8, 24>}, {transform_indices = @transform_5, window_bounds = array<i64: 1, 8, 256>}, {transform_indices = @transform_6, window_bounds = array<i64: 1, 1, 8, 2>}]} {
    %0 = tpu.iota {dimensions = array<i32: 1>} : vector<1x256xi32>
    %c16_i32 = arith.constant 16 : i32
    %c0_i32 = arith.constant 0 : i32
    %1 = arith.cmpi eq, %c16_i32, %c0_i32 : i32
    %c1_i32 = arith.constant 1 : i32
    %2 = arith.select %1, %c1_i32, %c16_i32 : i32
    %3 = vector.broadcast %2 : i32 to vector<1x256xi32>
    %4 = arith.remsi %0, %3 : vector<1x256xi32>
    %c0_i32_0 = arith.constant 0 : i32
    %5 = vector.broadcast %c0_i32_0 : i32 to vector<1x256xi32>
    %6 = arith.cmpi ne, %4, %5 : vector<1x256xi32>
    %c0_i32_1 = arith.constant 0 : i32
    %7 = vector.broadcast %c0_i32_1 : i32 to vector<1x256xi32>
    %8 = arith.cmpi slt, %4, %7 : vector<1x256xi32>
    %c0_i32_2 = arith.constant 0 : i32
    %9 = arith.cmpi slt, %2, %c0_i32_2 : i32
    %10 = vector.broadcast %9 : i1 to vector<1x256xi1>
    %11 = vector.broadcast %10 : vector<1x256xi1> to vector<1x256xi1>
    %12 = arith.xori %8, %11 : vector<1x256xi1>
    %13 = arith.andi %12, %6 : vector<1x256xi1>
    %14 = vector.broadcast %2 : i32 to vector<1x256xi32>
    %15 = arith.addi %4, %14 : vector<1x256xi32>
    %16 = arith.select %13, %15, %4 : vector<1x256xi1>, vector<1x256xi32>
    %c0_i32_3 = arith.constant 0 : i32
    %17 = vector.broadcast %c0_i32_3 : i32 to vector<1x256xi32>
    %18 = arith.cmpi eq, %16, %17 : vector<1x256xi32>
    %c15_i32 = arith.constant 15 : i32
    %19 = vector.broadcast %c15_i32 : i32 to vector<1x256xi32>
    %20 = arith.cmpi eq, %16, %19 : vector<1x256xi32>
    %c0 = arith.constant 0 : index
    %c0_4 = arith.constant 0 : index
    %c0_5 = arith.constant 0 : index
    %21 = vector.load %arg2[%c0, %c0_4, %c0_5] : memref<1x8x256xf32, #tpu.memory_space<vmem>>, vector<1x8x256xf32>
    %22 = vector.shape_cast %21 : vector<1x8x256xf32> to vector<8x256xf32>
    %c0_6 = arith.constant 0 : index
    %c0_7 = arith.constant 0 : index
    %23 = vector.load %arg5[%c0_6, %c0_7] : memref<8x24xf32, #tpu.memory_space<vmem>>, vector<8x24xf32>
    %c1_i32_8 = arith.constant 1 : i32
    %24 = tpu.dynamic_rotate %22 by %c1_i32_8 dim 1 : vector<8x256xf32>, i32 -> vector<8x256xf32>
    %cst = arith.constant 0.000000e+00 : f32
    %25 = vector.shape_cast %18 : vector<1x256xi1> to vector<1x256xi1>
    %26 = vector.broadcast %25 : vector<1x256xi1> to vector<8x256xi1>
    %27 = vector.broadcast %cst : f32 to vector<8x256xf32>
    %28 = arith.select %26, %27, %24 : vector<8x256xi1>, vector<8x256xf32>
    %c255_i32 = arith.constant 255 : i32
    %29 = tpu.dynamic_rotate %22 by %c255_i32 dim 1 : vector<8x256xf32>, i32 -> vector<8x256xf32>
    %cst_9 = arith.constant 0.000000e+00 : f32
    %30 = vector.shape_cast %20 : vector<1x256xi1> to vector<1x256xi1>
    %31 = vector.broadcast %30 : vector<1x256xi1> to vector<8x256xi1>
    %32 = vector.broadcast %cst_9 : f32 to vector<8x256xf32>
    %33 = arith.select %31, %32, %29 : vector<8x256xi1>, vector<8x256xf32>
    %34 = tpu.concatenate %28, %22, %33 in 0 : vector<8x256xf32>, vector<8x256xf32>, vector<8x256xf32> -> vector<24x256xf32>
    %cst_10 = arith.constant dense<0.000000e+00> : vector<8x256xf32>
    %35 = tpu.matmul %23, %34, %cst_10 {dimension_numbers = #tpu.dot_dimension_numbers<[1], [0], [0], [1], [0, 0, 1, 1], [], []>} : vector<8x24xf32>, vector<24x256xf32>, vector<8x256xf32> -> vector<8x256xf32>
    %c0_11 = arith.constant 0 : index
    %c0_12 = arith.constant 0 : index
    %36 = vector.load %arg3[%c0_11, %c0_12] : memref<8x1xf32, #tpu.memory_space<vmem>>, vector<8x1xf32>
    %37 = vector.broadcast %36 : vector<8x1xf32> to vector<8x256xf32>
    %38 = arith.mulf %35, %37 : vector<8x256xf32>
    %c0_13 = arith.constant 0 : index
    %c0_14 = arith.constant 0 : index
    %39 = vector.load %arg4[%c0_13, %c0_14] : memref<8x1xf32, #tpu.memory_space<vmem>>, vector<8x1xf32>
    %40 = vector.broadcast %39 : vector<8x1xf32> to vector<8x256xf32>
    %41 = arith.addf %38, %40 : vector<8x256xf32>
    %cst_15 = arith.constant 0.00999999977 : f32
    %42 = vector.broadcast %cst_15 : f32 to vector<8x256xf32>
    %43 = arith.mulf %42, %41 : vector<8x256xf32>
    %44 = arith.maximumf %41, %43 : vector<8x256xf32>
    %c0_16 = arith.constant 0 : index
    %c0_17 = arith.constant 0 : index
    %45 = vector.load %arg6[%c0_16, %c0_17] : memref<8x24xf32, #tpu.memory_space<vmem>>, vector<8x24xf32>
    %c1_i32_18 = arith.constant 1 : i32
    %46 = tpu.dynamic_rotate %44 by %c1_i32_18 dim 1 : vector<8x256xf32>, i32 -> vector<8x256xf32>
    %cst_19 = arith.constant 0.000000e+00 : f32
    %47 = vector.shape_cast %18 : vector<1x256xi1> to vector<1x256xi1>
    %48 = vector.broadcast %47 : vector<1x256xi1> to vector<8x256xi1>
    %49 = vector.broadcast %cst_19 : f32 to vector<8x256xf32>
    %50 = arith.select %48, %49, %46 : vector<8x256xi1>, vector<8x256xf32>
    %c255_i32_20 = arith.constant 255 : i32
    %51 = tpu.dynamic_rotate %44 by %c255_i32_20 dim 1 : vector<8x256xf32>, i32 -> vector<8x256xf32>
    %cst_21 = arith.constant 0.000000e+00 : f32
    %52 = vector.shape_cast %20 : vector<1x256xi1> to vector<1x256xi1>
    %53 = vector.broadcast %52 : vector<1x256xi1> to vector<8x256xi1>
    %54 = vector.broadcast %cst_21 : f32 to vector<8x256xf32>
    %55 = arith.select %53, %54, %51 : vector<8x256xi1>, vector<8x256xf32>
    %56 = tpu.concatenate %50, %44, %55 in 0 : vector<8x256xf32>, vector<8x256xf32>, vector<8x256xf32> -> vector<24x256xf32>
    %cst_22 = arith.constant dense<0.000000e+00> : vector<8x256xf32>
    %57 = tpu.matmul %45, %56, %cst_22 {dimension_numbers = #tpu.dot_dimension_numbers<[1], [0], [0], [1], [0, 0, 1, 1], [], []>} : vector<8x24xf32>, vector<24x256xf32>, vector<8x256xf32> -> vector<8x256xf32>
    %c0_23 = arith.constant 0 : index
    %c0_24 = arith.constant 0 : index
    %c0_25 = arith.constant 0 : index
    %58 = vector.load %arg7[%c0_23, %c0_24, %c0_25] : memref<1x8x256xf32, #tpu.memory_space<vmem>>, vector<1x8x256xf32>
    %59 = vector.shape_cast %58 : vector<1x8x256xf32> to vector<8x256xf32>
    %60 = vector.shape_cast %57 : vector<8x256xf32> to vector<1x8x256xf32>
    tpu.vector_store %arg7[%c0_23, %c0_24, %c0_25], %60 {strides = array<i32>} : memref<1x8x256xf32, #tpu.memory_space<vmem>>, vector<1x8x256xf32>,
    %cst_26 = arith.constant dense<0.000000e+00> : vector<8xf32>
    %61 = vector.multi_reduction <add>, %57, %cst_26 [1] : vector<8x256xf32> to vector<8xf32>
    %62 = vector.shape_cast %61 : vector<8xf32> to vector<8x1xf32>
    %63 = arith.mulf %57, %57 : vector<8x256xf32>
    %cst_27 = arith.constant dense<0.000000e+00> : vector<8xf32>
    %64 = vector.multi_reduction <add>, %63, %cst_27 [1] : vector<8x256xf32> to vector<8xf32>
    %65 = vector.shape_cast %64 : vector<8xf32> to vector<8x1xf32>
    %66 = tpu.concatenate %62, %65 in 1 : vector<8x1xf32>, vector<8x1xf32> -> vector<8x2xf32>
    %c0_28 = arith.constant 0 : index
    %c0_29 = arith.constant 0 : index
    %c0_30 = arith.constant 0 : index
    %c0_31 = arith.constant 0 : index
    %67 = vector.load %arg8[%c0_28, %c0_29, %c0_30, %c0_31] : memref<1x1x8x2xf32, #tpu.memory_space<vmem>>, vector<1x1x8x2xf32>
    %68 = vector.shape_cast %67 : vector<1x1x8x2xf32> to vector<8x2xf32>
    %69 = vector.shape_cast %66 : vector<8x2xf32> to vector<1x1x8x2xf32>
    tpu.vector_store %arg8[%c0_28, %c0_29, %c0_30, %c0_31], %69 {strides = array<i32>} : memref<1x1x8x2xf32, #tpu.memory_space<vmem>>, vector<1x1x8x2xf32>,
    return
  }
  func.func @transform_0(%arg0: i32, %arg1: i32) -> (i32, i32, i32) {
    %c0_i32 = arith.constant 0 : i32
    %c0_i32_0 = arith.constant 0 : i32
    return %arg0, %c0_i32, %arg1 : i32, i32, i32
  }
  func.func @transform_1(%arg0: i32, %arg1: i32) -> (i32, i32) {
    %c0_i32 = arith.constant 0 : i32
    %c0_i32_0 = arith.constant 0 : i32
    %c0_i32_1 = arith.constant 0 : i32
    return %c0_i32, %c0_i32_0 : i32, i32
  }
  func.func @transform_2(%arg0: i32, %arg1: i32) -> (i32, i32) {
    %c0_i32 = arith.constant 0 : i32
    %c0_i32_0 = arith.constant 0 : i32
    %c0_i32_1 = arith.constant 0 : i32
    return %c0_i32, %c0_i32_0 : i32, i32
  }
  func.func @transform_3(%arg0: i32, %arg1: i32) -> (i32, i32) {
    %c0_i32 = arith.constant 0 : i32
    %c0_i32_0 = arith.constant 0 : i32
    %c0_i32_1 = arith.constant 0 : i32
    return %c0_i32, %c0_i32_0 : i32, i32
  }
  func.func @transform_4(%arg0: i32, %arg1: i32) -> (i32, i32) {
    %c0_i32 = arith.constant 0 : i32
    %c0_i32_0 = arith.constant 0 : i32
    %c0_i32_1 = arith.constant 0 : i32
    return %c0_i32, %c0_i32_0 : i32, i32
  }
  func.func @transform_5(%arg0: i32, %arg1: i32) -> (i32, i32, i32) {
    %c0_i32 = arith.constant 0 : i32
    %c0_i32_0 = arith.constant 0 : i32
    return %arg0, %c0_i32, %arg1 : i32, i32, i32
  }
  func.func @transform_6(%arg0: i32, %arg1: i32) -> (i32, i32, i32, i32) {
    %c0_i32 = arith.constant 0 : i32
    %c0_i32_0 = arith.constant 0 : i32
    %c0_i32_1 = arith.constant 0 : i32
    return %arg0, %arg1, %c0_i32, %c0_i32_0 : i32, i32, i32, i32
  }
}

</mosaic_0001>

<bundles_post_ra>
// kernel: resblock2d.5
= control target key start
LH: loop header
LB: loop body
LE: loop exit
PB: predicated region body
PF: predicated region fallthrough
CT: control target
= control target key end

     0   :  { %s498_s15 = smov 0   ;;  %s500_s16 = smov 0   ;;  %s540_s0 = inlined_call_operand.vmem [shape: f32[2,8,256], index: 0, kind: input, shape index: {}]   ;;  %s541_s1 = inlined_call_operand.vmem [shape: f32[2,8,256], index: 1, kind: input, shape index: {}]   ;;  %s542_s2 = inlined_call_operand.vmem [shape: f32[8,1], index: 2, kind: input, shape index: {}]   ;;  %s543_s3 = inlined_call_operand.vmem [shape: f32[8,1], index: 3, kind: input, shape index: {}]   ;;  %s544_s4 = inlined_call_operand.vmem [shape: f32[2,8,256], index: 4, kind: output, shape index: {}]  }
   0x1   :  { %s502_s17 = smov 0  }
   0x2 LB: > { %s26_s18 = sadd.s32 1, %s466_s16  ;;  %p410_p0 = scmp.ge.s32.totalorder %s470_s17, 1  ;;  %s470_s17 = sphi %s502_s17, %s14_s17   ;;  %s466_s16 = sphi %s500_s16, %s546_s16   ;;  %s462_s15 = sphi %s498_s15, %s545_s15  }
   0x3   : > { %p28_p1 = scmp.ge.s32.totalorder %s26_s18, 2  ;;  %p200_p2 = scmp.lt.s32.totalorder %s470_s17, 3 }
   0x5   : > { %s548_s18 = smov (%p28_p1, %s26_s18), 0  ;;  %p201_p3 = pnand %p410_p0, %p200_p2 }
   0x6   : > { %p244_p4 = scmp.lt.s32.totalorder (!%p201_p3), %s462_s15, 1 }
   0x7   : > { %204 = sbr.rel (%p201_p3) target bundleno = 149 (0x95), region = 36 }
   0xc   : > { %v277_v0 = vld [vmem:[%s542_s2] sm:$0xff]  ;;  %v472_v1 = vmov 0   ;;  %s550_s15 = smov (!%p244_p4, %s462_s15), 1 }
   0xd   : > { %447 = vset.pattern.permute.xlu0 %v472_v1  ;;  %v287_v2 = vld [vmem:[%s543_s3] sm:$0xff]  ;;  %s419_s23 = sshll.u32 %s550_s15, 4 }
   0xe   : > { %280 = vperm.xlu0 %447, %v277_v0   ;;  %s261_s26 = scalar_lea.vmem %s541_s1, %s419_s23  ;;  %s251_s29 = scalar_lea.vmem %s540_s0, %s419_s23 }
   0xf   : > { %v275_v3 = vld [vmem:[%s261_s26] sm:$0xff]  ;;  %v276_v4 = vld [vmem:[%s261_s26 + $0x8] sm:$0xff]  ;;  %s271_s6 = scalar_lea.vmem %s544_s4, %s419_s23 }
  0x10   : > { %v273_v6 = vld [vmem:[%s251_s29] sm:$0xff]  ;;  %v274_v7 = vld [vmem:[%s251_s29 + $0x8] sm:$0xff] }
  0x12   : > { %290 = vperm.xlu0 %447, %v287_v2  }
  0x89   : > { %v281_v5 = vpop.permute.xlu0 %280 }
  0x8a   : > { %v283_v8 = vmul.f32 %v281_v5, %v275_v3  ;;  %v284_v9 = vmul.f32 %v281_v5, %v276_v4 }
  0x8c   : > { %v285_v10 = vadd.f32 %v283_v8, %v273_v6  ;;  %v286_v11 = vadd.f32 %v284_v9, %v274_v7 }
  0x8d   : > { %v291_v12 = vpop.permute.xlu0 %290 }
  0x8e   : > { %v293_v13 = vadd.f32 %v291_v12, %v285_v10  ;;  %v294_v14 = vadd.f32 %v291_v12, %v286_v11 }
  0x90   : > { %v295_v15 = vmul.f32 0.01, %v293_v13  ;;  %v296_v16 = vmul.f32 0.01, %v294_v14 }
  0x92   : > { %v297_v17 = vmax.f32 %v293_v13, %v295_v15  ;;  %v298_v18 = vmax.f32 %v294_v14, %v296_v16 }
  0x94   : > { %299 = vst [vmem:[%s271_s6] sm:$0xff] %v297_v17  ;;  %300 = vst [vmem:[%s271_s6 + $0x8] sm:$0xff] %v298_v18 }
  0x95 PF: > { %s14_s17 = sadd.s32 1, %s470_s17   ;;  %s545_s15 = smov %s466_s16 }
  0x96   : > { %p11_p5 = scmp.ge.s32.totalorder %s14_s17, 4   ;;  %s546_s16 = smov %s548_s18 }
  0x98   :  { %13 = sbr.rel (!%p11_p5) target bundleno = 2 (0x2), region = 69 }

// kernel: resblock2d.3
= control target key start
LH: loop header
LB: loop body
LE: loop exit
PB: predicated region body
PF: predicated region fallthrough
CT: control target
= control target key end

     0   :  { %s725_s15 = smov 0   ;;  %s727_s16 = smov 0   ;;  %s775_s0 = inlined_call_operand.vmem [shape: f32[2,4,256], index: 0, kind: input, shape index: {}]   ;;  %s776_s1 = inlined_call_operand.vmem [shape: f32[8,4], index: 1, kind: input, shape index: {}]   ;;  %s777_s2 = inlined_call_operand.vmem [shape: f32[8,24], index: 2, kind: input, shape index: {}]   ;;  %s778_s3 = inlined_call_operand.vmem [shape: f32[2,8,256], index: 3, kind: output, shape index: {0}]   ;;  %s779_s4 = inlined_call_operand.vmem [shape: f32[2,1,8,2], index: 4, kind: output, shape index: {1}]  }
   0x1   :  { %s729_s17 = smov 0  }
   0x2 LB: > { %s27_s18 = sadd.s32 1, %s691_s16  ;;  %p619_p0 = scmp.ge.s32.totalorder %s695_s17, 1  ;;  %s695_s17 = sphi %s729_s17, %s15_s17   ;;  %s691_s16 = sphi %s727_s16, %s781_s16   ;;  %s687_s15 = sphi %s725_s15, %s780_s15  }
   0x3   : > { %p29_p1 = scmp.ge.s32.totalorder %s27_s18, 2  ;;  %p188_p2 = scmp.lt.s32.totalorder %s695_s17, 3 }
   0x5   : > { %s783_s18 = smov (%p29_p1, %s27_s18), 0  ;;  %p189_p3 = pnand %p619_p0, %p188_p2 }
   0x6   : > { %p230_p4 = scmp.lt.s32.totalorder (!%p189_p3), %s687_s15, 1  ;;  %s698_s29 = smov (!%p189_p3), 1  }
   0x7   : > { %192 = sbr.rel (%p189_p3) target bundleno = 678 (0x2a6), region = 32  ;;  %s699_s30 = smov (!%p189_p3), 127  }
   0xc   : > { %v697_v0 = vmov 0.0   ;;  %s785_s15 = smov (!%p230_p4, %s687_s15), 1  ;;  %vm295_vm0 = vcmask 1043456   ;;  %v288_v3 = vld [vmem:[%s776_s1] sm:$0xff]  ;;  %vm291_vm1 = vcmask 31744   ;;  %v256_v6 = vlaneseq }
   0xd   : > { %364 = vmatprep.mubr.f32.mxu0 %v697_v0  ;;  %466 = vmatprep.mubr.f32.mxu1 %v697_v0  ;;  %s639_s19 = sshll.u32 %s785_s15, 3  ;;  %s640_s25 = sshll.u32 %s785_s15, 4  ;;  %v371_v18 = vld [vmem:[%s777_s2] sm:$0xff]  ;;  %vm398_vm8 = vcmask 195584   ;;  %vm483_vm9 = vcmask 7168   ;;  %vm485_vm10 = vcmask 15360  }
   0xe   : > { %s237_s22 = scalar_lea.vmem %s775_s0, %s639_s19  ;;  %s247_s28 = scalar_lea.vmem %s778_s3, %s640_s25  ;;  %v257_v7 = vand.u32 127, %v256_v6 }
   0xf   : > { %v287_v1 = vld [vmem:[%s237_s22] sm:$0xff]  ;;  %s255_s9 = scalar_lea.vmem %s779_s4, %s639_s19 }
  0x10   : > { %v290_v2 = vcombine.high %v287_v1, %v287_v1  ;;  %v258_v8 = vadd.s32 128, %v257_v7  ;;  %v263_v12 = vand.u32 15, %v257_v7  ;;  %vm389_vm2 = vcmp.lt.s32.totalorder %v257_v7, 127 }
  0x11   : > { %vm376_vm5 = vcmp.lt.s32.totalorder %v257_v7, 1 }
  0x12   : > { %625 = vmatprep.subr.msk.mxu0 %vm295_vm0, %v290_v2  ;;  %v270_v9 = vand.u32 15, %v258_v8  ;;  %vm642_vm4 = vcmp.ne.s32.totalorder %v263_v12, 15  ;;  %vm644_vm7 = vcmp.ne.s32.totalorder %v263_v12, 0 }
  0x13   : > { %626 = vmatpush1.msk.msra.mxu0 %vm295_vm0, %v287_v1 }
  0x14   : > { %627 = vmatmul.mubr.msk.f32.vlgmr.msra.gmra.mxu0 %vm291_vm1, %v288_v3  ;;  %vm641_vm3 = vcmp.ne.s32.totalorder %v270_v9, 15  ;;  %vm643_vm6 = vcmp.ne.s32.totalorder %v270_v9, 0 }
  0xd4   : > { %v366_v4 = vpop.f32.mrf.mxu0 }
  0xd5   : > { %372 = vrot.lane.b32.xlu1 %v366_v4, %s698_s29  ;;  %385 = vrot.lane.b32.xlu0 %v366_v4, %s699_s30  ;;  %473 = vst [vmem:[%s247_s28] sm:$0xff] %v366_v4 }
  0xd6   : > { %v368_v5 = vpop.f32.mrf.mxu0 }
  0xd7   : > { %474 = vst [vmem:[%s247_s28 + $0x8] sm:$0xff] %v368_v5 }
  0xd9   : > { %374 = vrot.lane.b32.xlu1 %v368_v5, %s698_s29  ;;  %387 = vrot.lane.b32.xlu0 %v368_v5, %s699_s30 }
 0x147   : > { %v373_v10 = vpop.permute.xlu1 %372  ;;  %v386_v11 = vpop.permute.xlu0 %385 }
 0x14b   : > { %v388_v13 = vpop.permute.xlu0 %387  ;;  %v375_v16 = vpop.permute.xlu1 %374 }
 0x14c   : > { %v391_v14 = vsel %vm389_vm2, %v388_v13, %v386_v11  ;;  %v390_v15 = vsel %vm389_vm2, %v386_v11, %v388_v13  ;;  %v377_v17 = vsel %vm376_vm5, %v373_v10, %v375_v16  ;;  %v378_v19 = vsel %vm376_vm5, %v375_v16, %v373_v10 }
 0x14d   : > { %629 = vmatprep.subr.msk.mxu1 %vm641_vm3, %v391_v14 }
 0x14e   : > { %631 = vmatpush1.msk.msra.mxu1 %vm642_vm4, %v390_v15 }
 0x14f   : > { %430 = vmatprep.subr.mxu1 %v368_v5 }
 0x150   : > { %431 = vmatpush1.msra.mxu1 %v366_v4 }
 0x151   : > { %633 = vmatprep.subr.msk.mxu1 %vm643_vm6, %v377_v17 }
 0x152   : > { %635 = vmatpush1.msk.msra.mxu1 %vm644_vm7, %v378_v19 }
 0x153   : > { %636 = vmatmul.mubr.msk.f32.vlgmr.msra.gmra.mxu1 %vm398_vm8, %v371_v18 }
 0x213   : > { %v468_v20 = vpop.f32.mrf.mxu1 }
 0x214   : > { %v478_v22 = vmul.f32 %v468_v20, %v468_v20 }
 0x215   : > { %v470_v21 = vpop.f32.mrf.mxu1 }
 0x216   : > { %v475_v23 = vadd.f32 %v470_v21, %v468_v20  ;;  %v479_v24 = vmul.f32 %v470_v21, %v470_v21 }
 0x218   : > { %476 = vadd.xlane.f32.xlu0 %v475_v23  ;;  %v480_v25 = vadd.f32 %v479_v24, %v478_v22 }
 0x21a   : > { %481 = vadd.xlane.f32.xlu1 %v480_v25 }
 0x2a1   : > { %v477_v26 = vpop.xlane.xlu0 %476 }
 0x2a3   : > { %v482_v27 = vpop.xlane.xlu1 %481 }
 0x2a4   : > { %v484_v28 = vsel %vm483_vm9, %v477_v26, %v482_v27 }
 0x2a5   : > { %486 = vst.msk [vmem:[%s255_s9] sm:$0xff] %vm485_vm10, %v484_v28 }
 0x2a6 PF: > { %s15_s17 = sadd.s32 1, %s695_s17   ;;  %s780_s15 = smov %s691_s16 }
 0x2a7   : > { %p12_p5 = scmp.ge.s32.totalorder %s15_s17, 4   ;;  %s781_s16 = smov %s783_s18 }
 0x2a9   :  { %14 = sbr.rel (!%p12_p5) target bundleno = 2 (0x2), region = 74 }

// kernel: resblock2d.4
= control target key start
LH: loop header
LB: loop body
LE: loop exit
PB: predicated region body
PF: predicated region fallthrough
CT: control target
= control target key end

     0   :  { %s827_s21 = smov 0   ;;  %s829_s22 = smov 0   ;;  %s933_s0 = inlined_call_operand.vmem [shape: f32[2,8,256], index: 0, kind: input, shape index: {}]   ;;  %s934_s1 = inlined_call_operand.vmem [shape: f32[8,1], index: 1, kind: input, shape index: {}]   ;;  %s935_s2 = inlined_call_operand.vmem [shape: f32[8,1], index: 2, kind: input, shape index: {}]   ;;  %s936_s3 = inlined_call_operand.vmem [shape: f32[8,24], index: 3, kind: input, shape index: {}]   ;;  %s937_s4 = inlined_call_operand.vmem [shape: f32[8,24], index: 4, kind: input, shape index: {}]   ;;  %s938_s5 = inlined_call_operand.vmem [shape: f32[2,8,256], index: 5, kind: output, shape index: {0}]   ;;  %s939_s6 = inlined_call_operand.vmem [shape: f32[2,1,8,2], index: 6, kind: output, shape index: {1}]  }
   0x1   :  { %s831_s23 = smov 0  }
   0x2 LB: > { %s29_s24 = sadd.s32 1, %s782_s22  ;;  %p702_p0 = scmp.ge.s32.totalorder %s786_s23, 1  ;;  %s786_s23 = sphi %s831_s23, %s17_s23   ;;  %s782_s22 = sphi %s829_s22, %s949_s22   ;;  %s778_s21 = sphi %s827_s21, %s948_s21  }
   0x3   : > { %p31_p1 = scmp.ge.s32.totalorder %s29_s24, 2  ;;  %p238_p2 = scmp.lt.s32.totalorder %s786_s23, 3 }
   0x5   : > { %s951_s24 = smov (%p31_p1, %s29_s24), 0  ;;  %p239_p3 = pnand %p702_p0, %p238_p2 }
   0x6   : > { %p284_p4 = scmp.lt.s32.totalorder (!%p239_p3), %s778_s21, 1  ;;  %s790_s29 = smov (!%p239_p3), 1  }
   0x7   : > { %242 = sbr.rel (%p239_p3) target bundleno = 806 (0x326), region = 40  ;;  %s791_s30 = smov (!%p239_p3), 127  }
   0xc   : > { %s953_s21 = smov (!%p284_p4, %s778_s21), 1  ;;  %v788_v0 = vmov 0.0   ;;  %v789_v2 = vmov 0   ;;  %v445_v4 = vld [vmem:[%s934_s1] sm:$0xff]  ;;  %v310_v6 = vlaneseq  ;;  %vm370_vm6 = vcmask 195584  }
   0xd   : > { %s728_s25 = sshll.u32 %s953_s21, 4  ;;  %438 = vmatprep.mubr.f32.mxu0 %v788_v0  ;;  %549 = vmatprep.mubr.f32.mxu1 %v788_v0  ;;  %v453_v5 = vld [vmem:[%s935_s2] sm:$0xff]  ;;  %s707_s18 = sshll.u32 %s953_s21, 3  ;;  %vm566_vm7 = vcmask 7168   ;;  %vm568_vm8 = vcmask 15360  }
   0xe   : > { %s291_s28 = scalar_lea.vmem %s933_s0, %s728_s25  ;;  %762 = vset.pattern.permute.xlu0 %v789_v2  ;;  %763 = vset.pattern.permute.xlu1 %v789_v2  ;;  %v311_v7 = vand.u32 127, %v310_v6  ;;  %v343_v22 = vld [vmem:[%s936_s3] sm:$0xff]  ;;  %s301_s17 = scalar_lea.vmem %s938_s5, %s728_s25 }
   0xf   : > { %v341_v1 = vld [vmem:[%s291_s28] sm:$0xff]  ;;  %v342_v3 = vld [vmem:[%s291_s28 + $0x8] sm:$0xff]  ;;  %s309_s26 = scalar_lea.vmem %s939_s6, %s707_s18 }
  0x10   : > { %344 = vrot.lane.b32.xlu1 %v341_v1, %s790_s29  ;;  %357 = vrot.lane.b32.xlu0 %v341_v1, %s791_s30  ;;  %v312_v8 = vadd.s32 128, %v311_v7  ;;  %v317_v12 = vand.u32 15, %v311_v7  ;;  %vm361_vm0 = vcmp.lt.s32.totalorder %v311_v7, 127  ;;  %vm348_vm3 = vcmp.lt.s32.totalorder %v311_v7, 1  ;;  %v465_v44 = vld [vmem:[%s937_s4] sm:$0xff] }
  0x12   : > { %v324_v9 = vand.u32 15, %v312_v8  ;;  %vm867_vm2 = vcmp.ne.s32.totalorder %v317_v12, 15  ;;  %vm881_vm5 = vcmp.ne.s32.totalorder %v317_v12, 0 }
  0x14   : > { %346 = vrot.lane.b32.xlu1 %v342_v3, %s790_s29  ;;  %359 = vrot.lane.b32.xlu0 %v342_v3, %s791_s30  ;;  %vm863_vm1 = vcmp.ne.s32.totalorder %v324_v9, 15  ;;  %vm877_vm4 = vcmp.ne.s32.totalorder %v324_v9, 0 }
  0x18   : > { %448 = vperm.xlu0 %762, %v445_v4   ;;  %456 = vperm.xlu1 %763, %v453_v5  }
  0x82   : > { %v345_v10 = vpop.permute.xlu1 %344  ;;  %v358_v11 = vpop.permute.xlu0 %357 }
  0x86   : > { %v360_v14 = vpop.permute.xlu0 %359  ;;  %v347_v18 = vpop.permute.xlu1 %346 }
  0x87   : > { %v363_v16 = vsel %vm361_vm0, %v360_v14, %v358_v11  ;;  %v362_v17 = vsel %vm361_vm0, %v358_v11, %v360_v14  ;;  %v349_v21 = vsel %vm348_vm3, %v345_v10, %v347_v18  ;;  %v350_v23 = vsel %vm348_vm3, %v347_v18, %v345_v10 }
  0x88   : > { %709 = vmatprep.subr.msk.mxu0 %vm863_vm1, %v363_v16 }
  0x89   : > { %711 = vmatpush1.msk.msra.mxu0 %vm867_vm2, %v362_v17 }
  0x8a   : > { %402 = vmatprep.subr.mxu0 %v342_v3 }
  0x8b   : > { %403 = vmatpush1.msra.mxu0 %v341_v1 }
  0x8c   : > { %713 = vmatprep.subr.msk.mxu0 %vm877_vm4, %v349_v21 }
  0x8d   : > { %715 = vmatpush1.msk.msra.mxu0 %vm881_vm5, %v350_v23 }
  0x8e   : > { %716 = vmatmul.mubr.msk.f32.vlgmr.msra.gmra.mxu0 %vm370_vm6, %v343_v22 }
  0x93   : > { %v449_v24 = vpop.permute.xlu0 %448  ;;  %v457_v26 = vpop.permute.xlu1 %456 }
 0x14e   : > { %v440_v25 = vpop.f32.mrf.mxu0 }
 0x14f   : > { %v451_v27 = vmul.f32 %v449_v24, %v440_v25 }
 0x150   : > { %v442_v28 = vpop.f32.mrf.mxu0 }
 0x151   : > { %v459_v29 = vadd.f32 %v457_v26, %v451_v27  ;;  %v452_v30 = vmul.f32 %v449_v24, %v442_v28 }
 0x153   : > { %v461_v31 = vmul.f32 0.01, %v459_v29  ;;  %v460_v32 = vadd.f32 %v457_v26, %v452_v30 }
 0x155   : > { %v463_v33 = vmax.f32 %v459_v29, %v461_v31  ;;  %v462_v34 = vmul.f32 0.01, %v460_v32 }
 0x157   : > { %474 = vrot.lane.b32.xlu1 %v463_v33, %s791_s30  ;;  %v464_v35 = vmax.f32 %v460_v32, %v462_v34 }
 0x159   : > { %476 = vrot.lane.b32.xlu0 %v464_v35, %s791_s30 }
 0x15b   : > { %466 = vrot.lane.b32.xlu1 %v463_v33, %s790_s29 }
 0x15d   : > { %468 = vrot.lane.b32.xlu0 %v464_v35, %s790_s29 }
 0x1c9   : > { %v475_v36 = vpop.permute.xlu1 %474 }
 0x1cb   : > { %v477_v37 = vpop.permute.xlu0 %476 }
 0x1cc   : > { %v479_v38 = vsel %vm361_vm0, %v477_v37, %v475_v36  ;;  %v478_v39 = vsel %vm361_vm0, %v475_v36, %v477_v37 }
 0x1cd   : > { %718 = vmatprep.subr.msk.mxu1 %vm863_vm1, %v479_v38  ;;  %v467_v40 = vpop.permute.xlu1 %466 }
 0x1ce   : > { %720 = vmatpush1.msk.msra.mxu1 %vm867_vm2, %v478_v39 }
 0x1cf   : > { %v469_v41 = vpop.permute.xlu0 %468  ;;  %513 = vmatprep.subr.mxu1 %v464_v35 }
 0x1d0   : > { %v470_v42 = vsel %vm348_vm3, %v467_v40, %v469_v41  ;;  %v471_v43 = vsel %vm348_vm3, %v469_v41, %v467_v40  ;;  %514 = vmatpush1.msra.mxu1 %v463_v33 }
 0x1d1   : > { %722 = vmatprep.subr.msk.mxu1 %vm877_vm4, %v470_v42 }
 0x1d2   : > { %724 = vmatpush1.msk.msra.mxu1 %vm881_vm5, %v471_v43 }
 0x1d3   : > { %725 = vmatmul.mubr.msk.f32.vlgmr.msra.gmra.mxu1 %vm370_vm6, %v465_v44 }
 0x293   : > { %v551_v45 = vpop.f32.mrf.mxu1 }
 0x294   : > { %556 = vst [vmem:[%s301_s17] sm:$0xff] %v551_v45  ;;  %v561_v49 = vmul.f32 %v551_v45, %v551_v45 }
 0x295   : > { %v553_v46 = vpop.f32.mrf.mxu1 }
 0x296   : > { %557 = vst [vmem:[%s301_s17 + $0x8] sm:$0xff] %v553_v46  ;;  %v562_v47 = vmul.f32 %v553_v46, %v553_v46  ;;  %v558_v48 = vadd.f32 %v553_v46, %v551_v45 }
 0x298   : > { %559 = vadd.xlane.f32.xlu1 %v558_v48  ;;  %v563_v50 = vadd.f32 %v562_v47, %v561_v49 }
 0x29a   : > { %564 = vadd.xlane.f32.xlu0 %v563_v50 }
 0x321   : > { %v560_v51 = vpop.xlane.xlu1 %559 }
 0x323   : > { %v565_v52 = vpop.xlane.xlu0 %564 }
 0x324   : > { %v567_v53 = vsel %vm566_vm7, %v560_v51, %v565_v52 }
 0x325   : > { %569 = vst.msk [vmem:[%s309_s26] sm:$0xff] %vm568_vm8, %v567_v53 }
 0x326 PF: > { %s17_s23 = sadd.s32 1, %s786_s23   ;;  %s948_s21 = smov %s782_s22 }
 0x327   : > { %p14_p5 = scmp.ge.s32.totalorder %s17_s23, 4   ;;  %s949_s22 = smov %s951_s24 }
 0x329   :  { %16 = sbr.rel (!%p14_p5) target bundleno = 2 (0x2), region = 82 }

</bundles_post_ra>
